<compile_context>
chip_gen: v7x
topology: tpu7x:2x2x1
jax: 0.10.0
libtpu: 0.0.40
codegen_flags: <defaults>
</compile_context>

<pallas_src>
import functools

import jax
import jax.numpy as jnp
from jax import lax
from jax.experimental import pallas as pl
from jax.experimental.pallas import tpu as pltpu


# ---------------------------------------------------------------------------
# Kernel
# ---------------------------------------------------------------------------
def _attention_kernel(use_weight, ls_true, ls_pad, *refs):
    if use_weight:
        (outs_ref, ctx_ref, wattn_ref, wout_s_ref, wout_x_ref, b_ref,
         out_ref, attn_ref) = refs
    else:
        (outs_ref, ctx_ref, wout_s_ref, wout_x_ref, b_ref,
         out_ref, attn_ref) = refs
        wattn_ref = None

    x = outs_ref[...]                       # (Bb, Tt, D)  input dtype
    c = ctx_ref[...]                        # (Bb, Lsp, D) input dtype
    bb, tt, d = x.shape
    rows = bb * tt

    if wattn_ref is not None:
        # nn.Linear(hidden, hidden, bias=False): x @ W^T (W^T pre-transposed),
        # one tall (Bb*Tt, D) x (D, D) MXU matmul.
        xf = jnp.dot(x.reshape(rows, d), wattn_ref[...],
                     preferred_element_type=jnp.float32)
        x = xf.reshape(bb, tt, d).astype(outs_ref.dtype)

    # attn logits: bmm(x, context^T) -> (Bb, Tt, Lsp); contraction over D.
    logits = jnp.einsum('btd,bsd->bts', x, c,
                        preferred_element_type=jnp.float32)
    if ls_pad > ls_true:
        # Mask the zero-padded source positions (lane-dense writeback padding).
        lane = lax.broadcasted_iota(jnp.int32, (1, 1, ls_pad), 2)
        logits = jnp.where(lane < ls_true, logits, -jnp.inf)

    # Numerically stable softmax over the source axis.  approx reciprocal only
    # when the stored attn is lower precision than f32 anyway.
    m = jnp.max(logits, axis=-1, keepdims=True)
    e = jnp.exp(logits - m)
    approx = jnp.dtype(attn_ref.dtype) != jnp.dtype(jnp.float32)
    inv = pl.reciprocal(jnp.sum(e, axis=-1, keepdims=True), approx=approx)
    # Single cast: reused for the scores matmul and the attn writeback.
    attn = (e * inv).astype(attn_ref.dtype)

    # scores = bmm(attn, context) -> (Bb, Tt, D)
    scores = jnp.einsum('bts,bsd->btd', attn.astype(c.dtype), c,
                        preferred_element_type=jnp.float32)

    # out = tanh(cat([scores, x], -1) @ W_out^T + b) with W_out pre-split:
    # two accumulating (Bb*Tt, D) x (D, D) matmuls -- no lane-axis concat.
    y = (jnp.dot(scores.reshape(rows, d).astype(wout_s_ref.dtype),
                 wout_s_ref[...], preferred_element_type=jnp.float32)
         + jnp.dot(x.reshape(rows, d).astype(wout_x_ref.dtype),
                   wout_x_ref[...], preferred_element_type=jnp.float32)
         + b_ref[...])

    out_ref[...] = jnp.tanh(y).reshape(bb, tt, d).astype(out_ref.dtype)
    attn_ref[...] = attn


# ---------------------------------------------------------------------------
# Parameter prep / tiling heuristics
# ---------------------------------------------------------------------------
def prepare_attention_params(params, dtype):
    """One-time parameter prep: fold transposes AND the W_out split into the
    stored layout so no per-call transpose/concat is needed."""
    d = params["b_out"].shape[0]
    w_out = params["w_out"]                                   # (D, 2D)
    prepared = {
        "wout_s_t": jnp.transpose(w_out[:, :d]).astype(dtype),    # scores half
        "wout_x_t": jnp.transpose(w_out[:, d:]).astype(dtype),    # x half
        "b_out": params["b_out"].reshape(1, d).astype(jnp.float32),
    }
    if "w_attn" in params:
        prepared["wattn_t"] = jnp.transpose(params["w_attn"]).astype(dtype)
    return prepared


def _vmem_capacity_bytes():
    """Approximate per-TensorCore VMEM (conservative for unknown parts)."""
    try:
        kind = jax.devices()[0].device_kind.lower()
    except Exception:
        return 64 << 20
    for tag in ("v5 lite", "v5e", "v5litepod", "v6", "trillium"):
        if tag in kind:
            return 128 << 20
    return 64 << 20            # v7x-class (or unknown): assume 64 MiB


def _sublane_align(itemsize):
    # f32 -> 8, bf16 -> 16, int8/fp8 -> 32 rows per packed sublane group.
    return max(8, 32 // max(1, int(itemsize)))


def _vmem_estimate(bb, tt, ls, d, in_sz, out_sz, use_weight):
    rows = bb * tt
    io = 2 * (bb * tt * d * in_sz          # outputs block (double buffered)
              + bb * ls * d * in_sz        # context block
              + bb * tt * d * out_sz       # out block
              + bb * tt * ls * out_sz)     # attn block
    w = ((1 if use_weight else 0) + 2) * d * d * in_sz + d * 4  # single buffered
    inter = rows * ls * 4 * 2 + rows * d * 4 * 3   # f32 logits/exp + scores/x/y
    return io + w + inter


def _choose_blocks(B, Lt, ls_pad, d, in_sz, out_sz, use_weight, budget, big_vmem):
    target_lt = 512 if big_vmem else 192          # v5e/v6e vs v7x-class
    target_b = 8
    align = _sublane_align(in_sz)

    divs = [x for x in range(1, Lt + 1) if Lt % x == 0]
    lt_cands = [x for x in divs if x % align == 0 and x <= target_lt]
    if not lt_cands:
        aligned = [x for x in divs if x % align == 0]
        lt_cands = [min(aligned)] if aligned else [Lt]
    b_cands = [x for x in range(1, B + 1) if B % x == 0 and x <= target_b] or [1]

    def est(bb, tt):
        return _vmem_estimate(bb, tt, ls_pad, d, in_sz, out_sz, use_weight)

    best, best_rows = None, -1
    for bb in b_cands:
        for tt in lt_cands:
            if est(bb, tt) <= budget and bb * tt > best_rows:
                best, best_rows = (bb, tt), bb * tt
    if best is None:                               # nothing fits -> smallest tile
        best = (min(b_cands), min(lt_cands))
    bb, tt = best

    # Keep both v7x TensorCores busy: ensure the grid has >= 2 tiles if possible.
    if (B // bb) * (Lt // tt) == 1:
        smaller_lt = [x for x in lt_cands if x < tt]
        smaller_b = [x for x in b_cands if x < bb]
        if smaller_lt:
            tt = max(smaller_lt)
        elif smaller_b:
            bb = max(smaller_b)
    return bb, tt


# ---------------------------------------------------------------------------
# Wrapper
# ---------------------------------------------------------------------------
def attention_layer(outputs, context, prepared, use_weight=False,
                    block_b=None, block_lt=None):
    """Pallas implementation of AttentionLayer.forward.

    `prepared` comes from prepare_attention_params().
    Returns (out, attn): out (B, Lt, D), attn (B, Lt, Ls), both in outputs.dtype.
    """
    B, Lt, D = outputs.shape
    Bc, Ls, Dc = context.shape
    assert B == Bc and D == Dc

    in_sz = jnp.dtype(outputs.dtype).itemsize
    out_sz = in_sz
    align = _sublane_align(in_sz)

    # Lane-dense attn writeback: pad the source axis to a multiple of 128 with
    # zeros (masked to -inf in-kernel) and slice the attn map back afterwards.
    ls_pad = ((Ls + 127) // 128) * 128
    context_p = context
    if ls_pad != Ls:
        context_p = jnp.pad(context, ((0, 0), (0, ls_pad - Ls), (0, 0)))

    cap = _vmem_capacity_bytes()
    big_vmem = cap >= (128 << 20)
    budget = max(8 << 20, cap // 3)                       # per-step working set
    vmem_limit = min(cap * 3 // 4, 100 << 20)             # scoped VMEM request

    if block_b is None or block_lt is None:
        auto_b, auto_lt = _choose_blocks(B, Lt, ls_pad, D, in_sz, out_sz,
                                         use_weight, budget, big_vmem)
        block_b = auto_b if block_b is None else block_b
        block_lt = auto_lt if block_lt is None else block_lt
    assert B % block_b == 0 and Lt % block_lt == 0
    # (8,128) rule for the out/attn blocks: second-minor dim must be 8-aligned
    # or cover the full axis.
    assert block_lt % 8 == 0 or block_lt == Lt
    if block_lt % align != 0 and block_b > 1:
        block_b = 1      # keep the in-kernel (Bb*Tt, D) flatten a free view

    grid = (B // block_b, Lt // block_lt)

    args = [outputs, context_p]
    if use_weight:
        args.append(prepared["wattn_t"])
    args += [prepared["wout_s_t"], prepared["wout_x_t"], prepared["b_out"]]

    out_shape = (
        jax.ShapeDtypeStruct((B, Lt, D), outputs.dtype),
        jax.ShapeDtypeStruct((B, Lt, ls_pad), outputs.dtype),
    )
    out_specs = (
        pl.BlockSpec((block_b, block_lt, D), lambda b, t: (b, t, 0)),
        pl.BlockSpec((block_b, block_lt, ls_pad), lambda b, t: (b, t, 0)),
    )

    kernel = functools.partial(_attention_kernel, use_weight, Ls, ls_pad)

    def make_call(single_buffer_weights):
        wkw = {"pipeline_mode": pl.Buffered(1)} if single_buffer_weights else {}
        in_specs = [
            pl.BlockSpec((block_b, block_lt, D), lambda b, t: (b, t, 0)),
            pl.BlockSpec((block_b, ls_pad, D), lambda b, t: (b, 0, 0)),
        ]
        if use_weight:
            in_specs.append(pl.BlockSpec((D, D), lambda b, t: (0, 0), **wkw))
        in_specs += [
            pl.BlockSpec((D, D), lambda b, t: (0, 0), **wkw),
            pl.BlockSpec((D, D), lambda b, t: (0, 0), **wkw),
            pl.BlockSpec((1, D), lambda b, t: (0, 0), **wkw),
        ]
        return pl.pallas_call(
            kernel,
            grid=grid,
            in_specs=in_specs,
            out_specs=out_specs,
            out_shape=out_shape,
            compiler_params=pltpu.CompilerParams(
                dimension_semantics=("parallel", "parallel"),
                vmem_limit_bytes=int(vmem_limit)),
        )

    try:
        out, attn_p = make_call(True)(*args)
    except Exception:
        # Fallback: double-buffered weight blocks if pl.Buffered(1) on a
        # constant-index BlockSpec is not supported by this jax version.
        out, attn_p = make_call(False)(*args)

    attn = attn_p if ls_pad == Ls else attn_p[:, :, :Ls]
    return out, attn


# ---------------------------------------------------------------------------
# Pure-JAX reference mirroring the PyTorch forward
# ---------------------------------------------------------------------------
def attention_ref(outputs, context, params, use_weight=False):
    x = outputs
    if use_weight:
        x = x @ jnp.transpose(params["w_attn"])
    attn = jnp.einsum("btd,bsd->bts", x, context)
    attn = jax.nn.softmax(attn, axis=-1)
    scores = jnp.einsum("bts,bsd->btd", attn, context)
    catted = jnp.concatenate([scores, x], axis=-1)
    out = jnp.tanh(catted @ jnp.transpose(params["w_out"]) + params["b_out"])
    return out, attn


if __name__ == "__main__":
    # Small shapes consistent with the module: dim == hidden_size == D.
    B, Lt, Ls, D = 2, 8, 16, 32

    key = jax.random.PRNGKey(0)
    k_out, k_ctx, k_wa, k_wo, k_bo = jax.random.split(key, 5)

    outputs = jax.random.normal(k_out, (B, Lt, D), dtype=jnp.float32)
    context = jax.random.normal(k_ctx, (B, Ls, D), dtype=jnp.float32)

    # Deterministic synthetic parameters (shapes from __init__).
    params = {
        "w_attn": jax.random.normal(k_wa, (D, D), dtype=jnp.float32) * 0.1,
        "w_out": jax.random.normal(k_wo, (D, 2 * D), dtype=jnp.float32) * 0.1,
        "b_out": jax.random.normal(k_bo, (D,), dtype=jnp.float32) * 0.1,
    }
    prepared = prepare_attention_params(params, outputs.dtype)

    for use_weight in (False, True):
        out, attn = attention_layer(outputs, context, prepared,
                                    use_weight=use_weight)
        out = jax.block_until_ready(out)
        attn = jax.block_until_ready(attn)

        out_r, attn_r = attention_ref(outputs, context, params,
                                      use_weight=use_weight)
        assert out.shape == (B, Lt, D) and attn.shape == (B, Lt, Ls)
        assert jnp.allclose(out, out_r, atol=1e-5, rtol=1e-5)
        assert jnp.allclose(attn, attn_r, atol=1e-5, rtol=1e-5)

    print("KERNEL_OK")
</pallas_src>

<mosaic_0001>
module attributes {stable_mosaic.version = 11 : i64} {
  func.func @_attention_kernel(%arg0: i32, %arg1: i32, %arg2: memref<1x8x32xf32, #tpu.memory_space<vmem>>, %arg3: memref<1x128x32xf32, #tpu.memory_space<vmem>>, %arg4: memref<32x32xf32, #tpu.memory_space<vmem>>, %arg5: memref<32x32xf32, #tpu.memory_space<vmem>>, %arg6: memref<1x32xf32, #tpu.memory_space<vmem>>, %arg7: memref<1x8x32xf32, #tpu.memory_space<vmem>>, %arg8: memref<1x8x128xf32, #tpu.memory_space<vmem>>) attributes {dimension_semantics = [#tpu.dimension_semantics<parallel>, #tpu.dimension_semantics<parallel>], iteration_bounds = array<i64: 2, 1>, scalar_prefetch = 0 : i64, scratch_operands = 0 : i64, tpu.core_type = #tpu.core_type<tc>, window_params = [{transform_indices = @transform_0, window_bounds = array<i64: 1, 8, 32>}, {transform_indices = @transform_1, window_bounds = array<i64: 1, 128, 32>}, {pipeline_mode = #tpu.pipeline_mode<synchronous>, transform_indices = @transform_2, window_bounds = array<i64: 32, 32>}, {pipeline_mode = #tpu.pipeline_mode<synchronous>, transform_indices = @transform_3, window_bounds = array<i64: 32, 32>}, {pipeline_mode = #tpu.pipeline_mode<synchronous>, transform_indices = @transform_4, window_bounds = array<i64: 1, 32>}, {transform_indices = @transform_5, window_bounds = array<i64: 1, 8, 32>}, {transform_indices = @transform_6, window_bounds = array<i64: 1, 8, 128>}]} {
    %c0 = arith.constant 0 : index
    %c0_0 = arith.constant 0 : index
    %c0_1 = arith.constant 0 : index
    %0 = vector.load %arg2[%c0, %c0_0, %c0_1] : memref<1x8x32xf32, #tpu.memory_space<vmem>>, vector<1x8x32xf32>
    %c0_2 = arith.constant 0 : index
    %c0_3 = arith.constant 0 : index
    %c0_4 = arith.constant 0 : index
    %1 = vector.load %arg3[%c0_2, %c0_3, %c0_4] : memref<1x128x32xf32, #tpu.memory_space<vmem>>, vector<1x128x32xf32>
    "tpu.trace_start"() <{level = 10 : i32, message = "btd,bsd->bts"}> : () -> ()
    %cst = arith.constant dense<0.000000e+00> : vector<1x8x128xf32>
    %2 = tpu.matmul %0, %1, %cst {dimension_numbers = #tpu.dot_dimension_numbers<[2], [2], [1], [1], [0, 0, 0, 1, 1, 1], [0], [0]>} : vector<1x8x32xf32>, vector<1x128x32xf32>, vector<1x8x128xf32> -> vector<1x8x128xf32>
    "tpu.trace_stop"() : () -> ()
    %3 = tpu.iota {dimensions = array<i32: 2>} : vector<1x1x128xi32>
    %c16_i32 = arith.constant 16 : i32
    %4 = vector.broadcast %c16_i32 : i32 to vector<1x1x128xi32>
    %5 = arith.cmpi slt, %3, %4 : vector<1x1x128xi32>
    %cst_5 = arith.constant 0xFF800000 : f32
    %6 = vector.shape_cast %5 : vector<1x1x128xi1> to vector<1x1x128xi1>
    %7 = vector.broadcast %6 : vector<1x1x128xi1> to vector<1x8x128xi1>
    %8 = vector.broadcast %cst_5 : f32 to vector<1x8x128xf32>
    %9 = arith.select %7, %2, %8 : vector<1x8x128xi1>, vector<1x8x128xf32>
    %cst_6 = arith.constant dense<0xFF800000> : vector<1x8xf32>
    %10 = vector.multi_reduction <maximumf>, %9, %cst_6 [2] : vector<1x8x128xf32> to vector<1x8xf32>
    %11 = vector.shape_cast %10 : vector<1x8xf32> to vector<1x8x1xf32>
    %12 = vector.broadcast %11 : vector<1x8x1xf32> to vector<1x8x128xf32>
    %13 = arith.subf %9, %12 : vector<1x8x128xf32>
    %14 = math.exp %13 : vector<1x8x128xf32>
    %cst_7 = arith.constant dense<0.000000e+00> : vector<1x8xf32>
    %15 = vector.multi_reduction <add>, %14, %cst_7 [2] : vector<1x8x128xf32> to vector<1x8xf32>
    %16 = vector.shape_cast %15 : vector<1x8xf32> to vector<1x8x1xf32>
    %17 = tpu.reciprocal %16 : vector<1x8x1xf32> -> vector<1x8x1xf32>
    %18 = vector.broadcast %17 : vector<1x8x1xf32> to vector<1x8x128xf32>
    %19 = arith.mulf %14, %18 : vector<1x8x128xf32>
    "tpu.trace_start"() <{level = 10 : i32, message = "bts,bsd->btd"}> : () -> ()
    %cst_8 = arith.constant dense<0.000000e+00> : vector<1x8x32xf32>
    %20 = tpu.matmul %19, %1, %cst_8 {dimension_numbers = #tpu.dot_dimension_numbers<[2], [1], [1], [2], [0, 0, 0, 1, 1, 2], [0], [0]>} : vector<1x8x128xf32>, vector<1x128x32xf32>, vector<1x8x32xf32> -> vector<1x8x32xf32>
    "tpu.trace_stop"() : () -> ()
    %21 = vector.shape_cast %20 : vector<1x8x32xf32> to vector<8x32xf32>
    %c0_9 = arith.constant 0 : index
    %c0_10 = arith.constant 0 : index
    %22 = vector.load %arg4[%c0_9, %c0_10] : memref<32x32xf32, #tpu.memory_space<vmem>>, vector<32x32xf32>
    %cst_11 = arith.constant dense<0.000000e+00> : vector<8x32xf32>
    %23 = tpu.matmul %21, %22, %cst_11 {dimension_numbers = #tpu.dot_dimension_numbers<[1], [0], [0], [1], [0, 0, 1, 1], [], []>} : vector<8x32xf32>, vector<32x32xf32>, vector<8x32xf32> -> vector<8x32xf32>
    %24 = vector.shape_cast %0 : vector<1x8x32xf32> to vector<8x32xf32>
    %c0_12 = arith.constant 0 : index
    %c0_13 = arith.constant 0 : index
    %25 = vector.load %arg5[%c0_12, %c0_13] : memref<32x32xf32, #tpu.memory_space<vmem>>, vector<32x32xf32>
    %cst_14 = arith.constant dense<0.000000e+00> : vector<8x32xf32>
    %26 = tpu.matmul %24, %25, %cst_14 {dimension_numbers = #tpu.dot_dimension_numbers<[1], [0], [0], [1], [0, 0, 1, 1], [], []>} : vector<8x32xf32>, vector<32x32xf32>, vector<8x32xf32> -> vector<8x32xf32>
    %27 = arith.addf %23, %26 : vector<8x32xf32>
    %c0_15 = arith.constant 0 : index
    %c0_16 = arith.constant 0 : index
    %28 = vector.load %arg6[%c0_15, %c0_16] : memref<1x32xf32, #tpu.memory_space<vmem>>, vector<1x32xf32>
    %29 = vector.broadcast %28 : vector<1x32xf32> to vector<8x32xf32>
    %30 = arith.addf %27, %29 : vector<8x32xf32>
    %31 = math.tanh %30 : vector<8x32xf32>
    %32 = vector.shape_cast %31 : vector<8x32xf32> to vector<1x8x32xf32>
    %c0_17 = arith.constant 0 : index
    %c0_18 = arith.constant 0 : index
    %c0_19 = arith.constant 0 : index
    %33 = vector.load %arg7[%c0_17, %c0_18, %c0_19] : memref<1x8x32xf32, #tpu.memory_space<vmem>>, vector<1x8x32xf32>
    tpu.vector_store %arg7[%c0_17, %c0_18, %c0_19], %32 {strides = array<i32>} : memref<1x8x32xf32, #tpu.memory_space<vmem>>, vector<1x8x32xf32>,
    %c0_20 = arith.constant 0 : index
    %c0_21 = arith.constant 0 : index
    %c0_22 = arith.constant 0 : index
    %34 = vector.load %arg8[%c0_20, %c0_21, %c0_22] : memref<1x8x128xf32, #tpu.memory_space<vmem>>, vector<1x8x128xf32>
    tpu.vector_store %arg8[%c0_20, %c0_21, %c0_22], %19 {strides = array<i32>} : memref<1x8x128xf32, #tpu.memory_space<vmem>>, vector<1x8x128xf32>,
    return
  }
  func.func @transform_0(%arg0: i32, %arg1: i32) -> (i32, i32, i32) {
    %c0_i32 = arith.constant 0 : i32
    %c0_i32_0 = arith.constant 0 : i32
    return %arg0, %arg1, %c0_i32 : i32, i32, i32
  }
  func.func @transform_1(%arg0: i32, %arg1: i32) -> (i32, i32, i32) {
    %c0_i32 = arith.constant 0 : i32
    %c0_i32_0 = arith.constant 0 : i32
    %c0_i32_1 = arith.constant 0 : i32
    return %arg0, %c0_i32, %c0_i32_0 : i32, i32, i32
  }
  func.func @transform_2(%arg0: i32, %arg1: i32) -> (i32, i32) {
    %c0_i32 = arith.constant 0 : i32
    %c0_i32_0 = arith.constant 0 : i32
    %c0_i32_1 = arith.constant 0 : i32
    return %c0_i32, %c0_i32_0 : i32, i32
  }
  func.func @transform_3(%arg0: i32, %arg1: i32) -> (i32, i32) {
    %c0_i32 = arith.constant 0 : i32
    %c0_i32_0 = arith.constant 0 : i32
    %c0_i32_1 = arith.constant 0 : i32
    return %c0_i32, %c0_i32_0 : i32, i32
  }
  func.func @transform_4(%arg0: i32, %arg1: i32) -> (i32, i32) {
    %c0_i32 = arith.constant 0 : i32
    %c0_i32_0 = arith.constant 0 : i32
    %c0_i32_1 = arith.constant 0 : i32
    return %c0_i32, %c0_i32_0 : i32, i32
  }
  func.func @transform_5(%arg0: i32, %arg1: i32) -> (i32, i32, i32) {
    %c0_i32 = arith.constant 0 : i32
    %c0_i32_0 = arith.constant 0 : i32
    return %arg0, %arg1, %c0_i32 : i32, i32, i32
  }
  func.func @transform_6(%arg0: i32, %arg1: i32) -> (i32, i32, i32) {
    %c0_i32 = arith.constant 0 : i32
    %c0_i32_0 = arith.constant 0 : i32
    return %arg0, %arg1, %c0_i32 : i32, i32, i32
  }
}

module attributes {stable_mosaic.version = 11 : i64} {
  func.func @_attention_kernel(%arg0: i32, %arg1: i32, %arg2: memref<1x8x32xf32, #tpu.memory_space<vmem>>, %arg3: memref<1x128x32xf32, #tpu.memory_space<vmem>>, %arg4: memref<32x32xf32, #tpu.memory_space<vmem>>, %arg5: memref<32x32xf32, #tpu.memory_space<vmem>>, %arg6: memref<1x32xf32, #tpu.memory_space<vmem>>, %arg7: memref<1x8x32xf32, #tpu.memory_space<vmem>>, %arg8: memref<1x8x128xf32, #tpu.memory_space<vmem>>) attributes {dimension_semantics = [#tpu.dimension_semantics<parallel>, #tpu.dimension_semantics<parallel>], iteration_bounds = array<i64: 2, 1>, scalar_prefetch = 0 : i64, scratch_operands = 0 : i64, tpu.core_type = #tpu.core_type<tc>, window_params = [{transform_indices = @transform_0, window_bounds = array<i64: 1, 8, 32>}, {transform_indices = @transform_1, window_bounds = array<i64: 1, 128, 32>}, {pipeline_mode = #tpu.pipeline_mode<synchronous>, transform_indices = @transform_2, window_bounds = array<i64: 32, 32>}, {pipeline_mode = #tpu.pipeline_mode<synchronous>, transform_indices = @transform_3, window_bounds = array<i64: 32, 32>}, {pipeline_mode = #tpu.pipeline_mode<synchronous>, transform_indices = @transform_4, window_bounds = array<i64: 1, 32>}, {transform_indices = @transform_5, window_bounds = array<i64: 1, 8, 32>}, {transform_indices = @transform_6, window_bounds = array<i64: 1, 8, 128>}]} {
    %c0 = arith.constant 0 : index
    %c0_0 = arith.constant 0 : index
    %c0_1 = arith.constant 0 : index
    %0 = vector.load %arg2[%c0, %c0_0, %c0_1] : memref<1x8x32xf32, #tpu.memory_space<vmem>>, vector<1x8x32xf32>
    %c0_2 = arith.constant 0 : index
    %c0_3 = arith.constant 0 : index
    %c0_4 = arith.constant 0 : index
    %1 = vector.load %arg3[%c0_2, %c0_3, %c0_4] : memref<1x128x32xf32, #tpu.memory_space<vmem>>, vector<1x128x32xf32>
    "tpu.trace_start"() <{level = 10 : i32, message = "btd,bsd->bts"}> : () -> ()
    %cst = arith.constant dense<0.000000e+00> : vector<1x8x128xf32>
    %2 = tpu.matmul %0, %1, %cst {dimension_numbers = #tpu.dot_dimension_numbers<[2], [2], [1], [1], [0, 0, 0, 1, 1, 1], [0], [0]>} : vector<1x8x32xf32>, vector<1x128x32xf32>, vector<1x8x128xf32> -> vector<1x8x128xf32>
    "tpu.trace_stop"() : () -> ()
    %3 = tpu.iota {dimensions = array<i32: 2>} : vector<1x1x128xi32>
    %c16_i32 = arith.constant 16 : i32
    %4 = vector.broadcast %c16_i32 : i32 to vector<1x1x128xi32>
    %5 = arith.cmpi slt, %3, %4 : vector<1x1x128xi32>
    %cst_5 = arith.constant 0xFF800000 : f32
    %6 = vector.shape_cast %5 : vector<1x1x128xi1> to vector<1x1x128xi1>
    %7 = vector.broadcast %6 : vector<1x1x128xi1> to vector<1x8x128xi1>
    %8 = vector.broadcast %cst_5 : f32 to vector<1x8x128xf32>
    %9 = arith.select %7, %2, %8 : vector<1x8x128xi1>, vector<1x8x128xf32>
    %cst_6 = arith.constant dense<0xFF800000> : vector<1x8xf32>
    %10 = vector.multi_reduction <maximumf>, %9, %cst_6 [2] : vector<1x8x128xf32> to vector<1x8xf32>
    %11 = vector.shape_cast %10 : vector<1x8xf32> to vector<1x8x1xf32>
    %12 = vector.broadcast %11 : vector<1x8x1xf32> to vector<1x8x128xf32>
    %13 = arith.subf %9, %12 : vector<1x8x128xf32>
    %14 = math.exp %13 : vector<1x8x128xf32>
    %cst_7 = arith.constant dense<0.000000e+00> : vector<1x8xf32>
    %15 = vector.multi_reduction <add>, %14, %cst_7 [2] : vector<1x8x128xf32> to vector<1x8xf32>
    %16 = vector.shape_cast %15 : vector<1x8xf32> to vector<1x8x1xf32>
    %17 = tpu.reciprocal %16 : vector<1x8x1xf32> -> vector<1x8x1xf32>
    %18 = vector.broadcast %17 : vector<1x8x1xf32> to vector<1x8x128xf32>
    %19 = arith.mulf %14, %18 : vector<1x8x128xf32>
    "tpu.trace_start"() <{level = 10 : i32, message = "bts,bsd->btd"}> : () -> ()
    %cst_8 = arith.constant dense<0.000000e+00> : vector<1x8x32xf32>
    %20 = tpu.matmul %19, %1, %cst_8 {dimension_numbers = #tpu.dot_dimension_numbers<[2], [1], [1], [2], [0, 0, 0, 1, 1, 2], [0], [0]>} : vector<1x8x128xf32>, vector<1x128x32xf32>, vector<1x8x32xf32> -> vector<1x8x32xf32>
    "tpu.trace_stop"() : () -> ()
    %21 = vector.shape_cast %20 : vector<1x8x32xf32> to vector<8x32xf32>
    %c0_9 = arith.constant 0 : index
    %c0_10 = arith.constant 0 : index
    %22 = vector.load %arg4[%c0_9, %c0_10] : memref<32x32xf32, #tpu.memory_space<vmem>>, vector<32x32xf32>
    %cst_11 = arith.constant dense<0.000000e+00> : vector<8x32xf32>
    %23 = tpu.matmul %21, %22, %cst_11 {dimension_numbers = #tpu.dot_dimension_numbers<[1], [0], [0], [1], [0, 0, 1, 1], [], []>} : vector<8x32xf32>, vector<32x32xf32>, vector<8x32xf32> -> vector<8x32xf32>
    %24 = vector.shape_cast %0 : vector<1x8x32xf32> to vector<8x32xf32>
    %c0_12 = arith.constant 0 : index
    %c0_13 = arith.constant 0 : index
    %25 = vector.load %arg5[%c0_12, %c0_13] : memref<32x32xf32, #tpu.memory_space<vmem>>, vector<32x32xf32>
    %cst_14 = arith.constant dense<0.000000e+00> : vector<8x32xf32>
    %26 = tpu.matmul %24, %25, %cst_14 {dimension_numbers = #tpu.dot_dimension_numbers<[1], [0], [0], [1], [0, 0, 1, 1], [], []>} : vector<8x32xf32>, vector<32x32xf32>, vector<8x32xf32> -> vector<8x32xf32>
    %27 = arith.addf %23, %26 : vector<8x32xf32>
    %c0_15 = arith.constant 0 : index
    %c0_16 = arith.constant 0 : index
    %28 = vector.load %arg6[%c0_15, %c0_16] : memref<1x32xf32, #tpu.memory_space<vmem>>, vector<1x32xf32>
    %29 = vector.broadcast %28 : vector<1x32xf32> to vector<8x32xf32>
    %30 = arith.addf %27, %29 : vector<8x32xf32>
    %31 = math.tanh %30 : vector<8x32xf32>
    %32 = vector.shape_cast %31 : vector<8x32xf32> to vector<1x8x32xf32>
    %c0_17 = arith.constant 0 : index
    %c0_18 = arith.constant 0 : index
    %c0_19 = arith.constant 0 : index
    %33 = vector.load %arg7[%c0_17, %c0_18, %c0_19] : memref<1x8x32xf32, #tpu.memory_space<vmem>>, vector<1x8x32xf32>
    tpu.vector_store %arg7[%c0_17, %c0_18, %c0_19], %32 {strides = array<i32>} : memref<1x8x32xf32, #tpu.memory_space<vmem>>, vector<1x8x32xf32>,
    %c0_20 = arith.constant 0 : index
    %c0_21 = arith.constant 0 : index
    %c0_22 = arith.constant 0 : index
    %34 = vector.load %arg8[%c0_20, %c0_21, %c0_22] : memref<1x8x128xf32, #tpu.memory_space<vmem>>, vector<1x8x128xf32>
    tpu.vector_store %arg8[%c0_20, %c0_21, %c0_22], %19 {strides = array<i32>} : memref<1x8x128xf32, #tpu.memory_space<vmem>>, vector<1x8x128xf32>,
    return
  }
  func.func @transform_0(%arg0: i32, %arg1: i32) -> (i32, i32, i32) {
    %c0_i32 = arith.constant 0 : i32
    %c0_i32_0 = arith.constant 0 : i32
    return %arg0, %arg1, %c0_i32 : i32, i32, i32
  }
  func.func @transform_1(%arg0: i32, %arg1: i32) -> (i32, i32, i32) {
    %c0_i32 = arith.constant 0 : i32
    %c0_i32_0 = arith.constant 0 : i32
    %c0_i32_1 = arith.constant 0 : i32
    return %arg0, %c0_i32, %c0_i32_0 : i32, i32, i32
  }
  func.func @transform_2(%arg0: i32, %arg1: i32) -> (i32, i32) {
    %c0_i32 = arith.constant 0 : i32
    %c0_i32_0 = arith.constant 0 : i32
    %c0_i32_1 = arith.constant 0 : i32
    return %c0_i32, %c0_i32_0 : i32, i32
  }
  func.func @transform_3(%arg0: i32, %arg1: i32) -> (i32, i32) {
    %c0_i32 = arith.constant 0 : i32
    %c0_i32_0 = arith.constant 0 : i32
    %c0_i32_1 = arith.constant 0 : i32
    return %c0_i32, %c0_i32_0 : i32, i32
  }
  func.func @transform_4(%arg0: i32, %arg1: i32) -> (i32, i32) {
    %c0_i32 = arith.constant 0 : i32
    %c0_i32_0 = arith.constant 0 : i32
    %c0_i32_1 = arith.constant 0 : i32
    return %c0_i32, %c0_i32_0 : i32, i32
  }
  func.func @transform_5(%arg0: i32, %arg1: i32) -> (i32, i32, i32) {
    %c0_i32 = arith.constant 0 : i32
    %c0_i32_0 = arith.constant 0 : i32
    return %arg0, %arg1, %c0_i32 : i32, i32, i32
  }
  func.func @transform_6(%arg0: i32, %arg1: i32) -> (i32, i32, i32) {
    %c0_i32 = arith.constant 0 : i32
    %c0_i32_0 = arith.constant 0 : i32
    return %arg0, %arg1, %c0_i32 : i32, i32, i32
  }
}

</mosaic_0001>

<bundles_post_ra>
// kernel: tpu_custom_call.1
= control target key start
LH: loop header
LB: loop body
LE: loop exit
PB: predicated region body
PF: predicated region fallthrough
CT: control target
= control target key end

     0   :  { %12 = vsyncpa [#allocation3], 0  ;;  %s1556_s0 = inlined_call_operand.vmem [shape: f32[2,8,32], index: 0, kind: input, shape index: {}]   ;;  %s1557_s1 = inlined_call_operand.vmem [shape: f32[2,128,32], index: 1, kind: input, shape index: {}]   ;;  %s1558_s2 = inlined_call_operand.vmem [shape: f32[32,32], index: 2, kind: input, shape index: {}]   ;;  %s1559_s3 = inlined_call_operand.vmem [shape: f32[32,32], index: 3, kind: input, shape index: {}]   ;;  %s1560_s4 = inlined_call_operand.vmem [shape: f32[1,32], index: 4, kind: input, shape index: {}]   ;;  %s1561_s5 = inlined_call_operand.hbm [shape: f32[2,8,32], index: 5, kind: output, shape index: {0}]   ;;  %s1562_s6 = inlined_call_operand.hbm [shape: f32[2,8,128], index: 6, kind: output, shape index: {1}]  }
   0x1   :  { %14 = vsyncpa [#allocation3 + $0x1], 0 }
   0x2   :  { %15 = vsyncpa [#allocation5], 0 }
   0x3   :  { %17 = vsyncpa [#allocation5 + $0x1], 0  ;;  %s1303_s21 = smov 0   ;;  %s1305_s22 = smov 0  }
   0x4   :  { %s1307_s23 = smov 0   ;;  %s1309_s24 = smov 0  }
   0x5   :  { %s1311_s25 = smov 0   ;;  %s1313_s26 = smov 0  }
   0x6 LB: > { %s841_s27 = sadd.s32 4294967295, %s1261_s26   ;;  %s842_s28 = sadd.s32 4294967294, %s1261_s26   ;;  %s1261_s26 = sphi %s1313_s26, %s23_s26   ;;  %s1257_s25 = sphi %s1311_s25, %s1571_s25   ;;  %s1253_s24 = sphi %s1309_s24, %s1570_s24   ;;  %s1249_s23 = sphi %s1307_s23, %s1569_s23   ;;  %s1245_s22 = sphi %s1305_s22, %s1568_s22   ;;  %s1241_s21 = sphi %s1303_s21, %s1567_s21  }
   0x7   : > { %s35_s29 = sadd.s32 1, %s1257_s25  ;;  %s161_s30 = sadd.s32 1, %s1249_s23 }
   0x8   : > { %p37_p0 = scmp.ge.s32.totalorder %s35_s29, 2  ;;  %p171_p1 = scmp.ne.s32.totalorder %s1249_s23, %s1245_s22 }
   0x9   : > { %p172_p2 = scmp.eq.s32.totalorder %s841_s27, 1  ;;  %p177_p3 = scmp.ne.s32.totalorder %s1245_s22, %s1241_s21 }
   0xa   : > { %s1573_s29 = smov (%p37_p0, %s35_s29), 0  ;;  %p178_p5 = scmp.eq.s32.totalorder %s842_s28, 1 }
   0xb   : > { %p1343_p4 = por %p172_p2, %p171_p1  ;;  %s156_s8 = ssub.s32 %s1257_s25, %s1573_s29 }
   0xc   : > { %p845_p6 = scmp.ge.s32.totalorder %s1261_s26, 1  ;;  %p159_p7 = scmp.eq.s32.totalorder %s156_s8, 0 }
   0xd   : > { %p1350_p8 = por %p178_p5, %p177_p3  ;;  %p251_p9 = scmp.lt.s32.totalorder %s1261_s26, 3 }
   0xe   : > { %s1356_s10 = scalar_select %p159_p7, %s1249_s23, %s161_s30  }
   0xf   : > { %p252_p10 = pnand %p845_p6, %p251_p9 }
  0x10   : > { %p293_p11 = scmp.lt.s32.totalorder (!%p252_p10), %s1253_s24, 1  ;;  %v1263_v0 = vmov (!%p252_p10), 0.0|0.0   ;;  %vm1264_vm0 = vmmov (!%p252_p10), 0   ;;  %v1265_v1 = vmov (!%p252_p10), 0.0   ;;  %vm322_vm1 = vcmask (!%p252_p10), 261120   ;;  %s1433_s20 = sand.u32 (!%p252_p10), 1, %s1245_s22  }
  0x11   : > { %255 = sbr.rel (%p252_p10) target bundleno = 1072 (0x430), region = 40  ;;  %1014 = vmatprep.subr.bf16.mxu0 (!%p252_p10), %v1263_v0  ;;  %954 = vmatprep.mubr.msk.f32.mxu0 (!%p252_p10), %vm1264_vm0, %v1265_v1  ;;  %vm1378_vm2 = vmpackc.low (!%p252_p10), %vm322_vm1, %vm322_vm1  ;;  %v444_v28 = vlaneseq (!%p252_p10)  ;;  %v533_v38 = vld [vmem:[%s1559_s3] sm:$0xff] (!%p252_p10)  ;;  %v534_v39 = vld [vmem:[%s1559_s3 + $0x8] sm:$0xff] (!%p252_p10)  ;;  %s873_s13 = sshll.u32 (!%p252_p10), %s1253_s24, 7 }
  0x12   : > { %1046 = vmatprep.subr.bf16.mxu1 (!%p252_p10), %v1263_v0  ;;  %989 = vmatprep.mubr.msk.f32.mxu1 (!%p252_p10), %vm1264_vm0, %v1265_v1  ;;  %v1071_v41 = vpack.c.bf16 (!%p252_p10), %v534_v39, %v533_v38  ;;  %v535_v43 = vld [vmem:[%s1559_s3 + $0x10] sm:$0xff] (!%p252_p10)  ;;  %v536_v44 = vld [vmem:[%s1559_s3 + $0x18] sm:$0xff] (!%p252_p10)  ;;  %v529_v46 = vld [vmem:[%s1558_s2] sm:$0xff] (!%p252_p10)  ;;  %s1477_s17 = scalar_lea.hbm (!%p252_p10), %s1562_s6, %s873_s13  ;;  %s1266_s28 = smov (!%p252_p10), [#allocation4]  }
  0x13   : > { %v445_v29 = vand.u32 (!%p252_p10), 127, %v444_v28  ;;  %v1074_v45 = vpack.c.bf16 (!%p252_p10), %v536_v44, %v535_v43  ;;  %v530_v47 = vld [vmem:[%s1558_s2 + $0x8] sm:$0xff] (!%p252_p10)  ;;  %v531_v49 = vld [vmem:[%s1558_s2 + $0x10] sm:$0xff] (!%p252_p10)  ;;  %v532_v50 = vld [vmem:[%s1558_s2 + $0x18] sm:$0xff] (!%p252_p10)  ;;  %s1155_s30 = sshll.u32 (!%p252_p10), %s1266_s28, 4  ;;  %s1156_s30 = int_to_ptr.vmem [resolvable:$false] %s1155_s30 }
  0x14   : > { %v1077_v48 = vpack.c.bf16 (!%p252_p10), %v530_v47, %v529_v46  ;;  %v1080_v51 = vpack.c.bf16 (!%p252_p10), %v532_v50, %v531_v49  ;;  %s1157_s8 = scalar_lea.vmem (!%p252_p10), %s1156_s30, 256 }
  0x15   : > { %vm446_vm3 = vcmp.lt.s32.totalorder (!%p252_p10), %v445_v29, 16 }
  0x18   : > { %s1363_s11 = scalar_select %p293_p11, %s1253_s24, 1 }
  0x1a   : > { %s877_s12 = sshll.u32 %s1363_s11, 7  ;;  %s848_s16 = sshll.u32 %s1363_s11, 3 }
  0x1b   : > { %s1372_s15 = scalar_lea.vmem %s1557_s1, %s877_s12  ;;  %s299_s19 = scalar_lea.vmem %s1556_s0, %s848_s16 }
  0x1c   : > { %v306_v2 = vld [vmem:[%s1372_s15] sm:$0xff]  ;;  %v307_v3 = vld [vmem:[%s1372_s15 + $0x8] sm:$0xff]  ;;  %v308_v6 = vld [vmem:[%s1372_s15 + $0x10] sm:$0xff]  ;;  %s846_s11 = sshll.u32 %s1433_s20, 3 }
  0x1d   : > { %v1015_v5 = vpack.c.bf16 %v307_v3, %v306_v2  ;;  %v309_v7 = vld [vmem:[%s1372_s15 + $0x18] sm:$0xff]  ;;  %v310_v9 = vld [vmem:[%s1372_s15 + $0x20] sm:$0xff]  ;;  %v311_v10 = vld [vmem:[%s1372_s15 + $0x28] sm:$0xff]  ;;  %s292_s16 = scalar_lea.vmem [#allocation4], %s846_s11 }
  0x1e   : > { %v1019_v8 = vpack.c.bf16 %v309_v7, %v308_v6  ;;  %v1023_v11 = vpack.c.bf16 %v311_v10, %v310_v9  ;;  %v312_v12 = vld [vmem:[%s1372_s15 + $0x30] sm:$0xff]  ;;  %v313_v13 = vld [vmem:[%s1372_s15 + $0x38] sm:$0xff]  ;;  %v314_v15 = vld [vmem:[%s1372_s15 + $0x40] sm:$0xff]  ;;  %s725_s18 = sshll.u32 %s292_s16, 4  ;;  %s726_s18 = int_to_ptr.vmem [resolvable:$true] %s725_s18 }
  0x1f   : > { %1017 = vmatpush3.bf16.xpose.msk.msra.mxu0 %vm1378_vm2, %v1015_v5  ;;  %1048 = vmatpush3.bf16.msra.mxu1 %v1015_v5  ;;  %v1027_v14 = vpack.c.bf16 %v313_v13, %v312_v12  ;;  %v315_v16 = vld [vmem:[%s1372_s15 + $0x48] sm:$0xff]  ;;  %v316_v18 = vld [vmem:[%s1372_s15 + $0x50] sm:$0xff]  ;;  %v317_v19 = vld [vmem:[%s1372_s15 + $0x58] sm:$0xff]  ;;  %s1151_s27 = scalar_lea.vmem %s726_s18, 128  ;;  %p1158_p1 = scmp.lt.s32.totalorder %s726_s18, %s1156_s30 }
  0x20   : > { %1018 = vmatprep.subr.bf16.mxu0 %v1263_v0  ;;  %1049 = vmatprep.subr.bf16.mxu1 %v1263_v0  ;;  %v1031_v17 = vpack.c.bf16 %v315_v16, %v314_v15  ;;  %v1035_v20 = vpack.c.bf16 %v317_v19, %v316_v18  ;;  %v318_v21 = vld [vmem:[%s1372_s15 + $0x60] sm:$0xff]  ;;  %v319_v22 = vld [vmem:[%s1372_s15 + $0x68] sm:$0xff]  ;;  %v320_v24 = vld [vmem:[%s1372_s15 + $0x70] sm:$0xff]  ;;  %p1152_p12 = scmp.ne.s32.totalorder %s726_s18, %s1151_s27  ;;  %p1159_p2 = scmp.lt.s32.totalorder %s1157_s8, %s1151_s27 }
  0x21   : > { %v1039_v23 = vpack.c.bf16 %v319_v22, %v318_v21  ;;  %v321_v25 = vld [vmem:[%s1372_s15 + $0x78] sm:$0xff]  ;;  %v305_v27 = vld [vmem:[%s299_s19] sm:$0xff]  ;;  %s697_s19 = scalar_lea.sflag [#allocation5], %s1433_s20 }
  0x22   : > { %v1043_v26 = vpack.c.bf16 %v321_v25, %v320_v24  ;;  %p1153_p13 = pnand %p1152_p12, %p1343_p4  ;;  %p1160_p3 = por %p1159_p2, %p1158_p1 }
  0x23   : > { %1051 = vmatpush3.bf16.msra.mxu1 %v1019_v8 }
  0x24   : > { %1052 = vmatprep.subr.bf16.mxu1 %v1263_v0  ;;  %p1154_p0 = pneg %p1153_p13 }
  0x26   : > { %p1161_p5 = pnand %p1160_p3, %p1154_p0 }
  0x27   : > { %1021 = vmatpush3.bf16.xpose.msk.msra.mxu0 %vm1378_vm2, %v1019_v8  ;;  %1054 = vmatpush3.bf16.msra.mxu1 %v1023_v11 }
  0x28   : > { %1022 = vmatprep.subr.bf16.mxu0 %v1263_v0  ;;  %1055 = vmatprep.subr.bf16.mxu1 %v1263_v0 }
  0x2b   : > { %1057 = vmatpush3.bf16.msra.mxu1 %v1027_v14 }
  0x2c   : > { %1058 = vmatprep.subr.bf16.mxu1 %v1263_v0 }
  0x2f   : > { %1025 = vmatpush3.bf16.xpose.msk.msra.mxu0 %vm1378_vm2, %v1023_v11  ;;  %1060 = vmatpush3.bf16.msra.mxu1 %v1031_v17 }
  0x30   : > { %1026 = vmatprep.subr.bf16.mxu0 %v1263_v0  ;;  %1061 = vmatprep.subr.bf16.mxu1 %v1263_v0 }
  0x33   : > { %1063 = vmatpush3.bf16.msra.mxu1 %v1035_v20 }
  0x34   : > { %1064 = vmatprep.subr.bf16.mxu1 %v1263_v0 }
  0x37   : > { %1029 = vmatpush3.bf16.xpose.msk.msra.mxu0 %vm1378_vm2, %v1027_v14  ;;  %1066 = vmatpush3.bf16.msra.mxu1 %v1039_v23 }
  0x38   : > { %1030 = vmatprep.subr.bf16.mxu0 %v1263_v0  ;;  %1067 = vmatprep.subr.bf16.mxu1 %v1263_v0 }
  0x3b   : > { %1069 = vmatpush3.bf16.msra.mxu1 %v1043_v26 }
  0x3c   : > { %1070 = vmatprep.subr.bf16.mxu1 %v1263_v0 }
  0x3f   : > { %1033 = vmatpush3.bf16.xpose.msk.msra.mxu0 %vm1378_vm2, %v1031_v17 }
  0x40   : > { %1034 = vmatprep.subr.bf16.mxu0 %v1263_v0 }
  0x47   : > { %1037 = vmatpush3.bf16.xpose.msk.msra.mxu0 %vm1378_vm2, %v1035_v20 }
  0x48   : > { %1038 = vmatprep.subr.bf16.mxu0 %v1263_v0 }
  0x4f   : > { %1041 = vmatpush3.bf16.xpose.msk.msra.mxu0 %vm1378_vm2, %v1039_v23 }
  0x50   : > { %1042 = vmatprep.subr.bf16.mxu0 %v1263_v0 }
  0x57   : > { %1045 = vmatpush3.bf16.xpose.msk.msra.mxu0 %vm1378_vm2, %v1043_v26 }
  0x5e   : > { %955 = vmatmul.mubr.msk.f32.vlgmr.msra.gmra.mrb[0].mxu0 %vm322_vm1, %v305_v27 }
 0x131   : > { %v440_v30 = vpop.f32.mrb[0].mxu0 }
 0x132   : > { %v956_v31 = vpop.f32.mrb[1].mxu0  ;;  %v449_v32 = vsel %vm446_vm3, %v440_v30, -inf }
 0x133   : > { %450 = vmax.xlane.f32.xlu0 %v449_v32 }
 0x1c0   : > { %v451_v33 = vpop.xlane.xlu0 %450 }
 0x1c1   : > { %v452_v34 = vsub.f32 %v449_v32, %v451_v33 }
 0x1c3   : > { %v453_v35 = vmul.f32 1.442695, %v452_v34 }
 0x1c5   : > { %1145 = vpow2.f32 %v453_v35 }
 0x1cf   : > { %v1146_v36 = vpop.eup %1145 }
 0x1d0   : > { %455 = vadd.xlane.f32.xlu0 %v1146_v36 }
 0x25d   : > { %v456_v37 = vpop.xlane.xlu0 %455 }
 0x25e   : > { %1147 = vrcp.f32 %v456_v37 }
 0x268   : > { %v1148_v40 = vpop.eup %1147 }
 0x269   : > { %v458_v42 = vmul.f32 %v1148_v40, %v1146_v36 }
 0x26b   : > { %990 = vmatmul.mubr.f32.vlgmr.msra.gmra.mrb[0].mxu1 %v458_v42  ;;  %690 = vst [vmem:[%s292_s16] sm:$0xff] %v458_v42 }
 0x26c   : > { %1072 = vmatpush3.bf16.msra.mxu1 %v1071_v41  ;;  %1000 = vmatprep.mubr.msk.f32.mxu1 %vm1264_vm0, %v1265_v1 }
 0x26d   : > { %1073 = vmatprep.subr.bf16.mxu1 %v1263_v0 }
 0x270   : > { %1075 = vmatpush3.bf16.msra.mxu1 %v1074_v45 }
 0x271   : > { %1076 = vmatprep.subr.bf16.mxu1 %v1263_v0 }
 0x273   : > { %1001 = vmatmul.mubr.msk.f32.vlgmr.msra.gmra.mrb[2].mxu1 %vm322_vm1, %v305_v27 }
 0x274   : > { %1078 = vmatpush3.bf16.msra.mxu1 %v1077_v48  ;;  %1011 = vmatprep.mubr.msk.f32.mxu1 %vm1264_vm0, %v1265_v1 }
 0x275   : > { %1079 = vmatprep.subr.bf16.mxu1 %v1263_v0 }
 0x278   : > { %1081 = vmatpush3.bf16.msra.mxu1 %v1080_v51 }
 0x33e   : > { %v525_v52 = vpop.f32.mrb[0].mxu1 }
 0x33f   : > { %v991_v53 = vpop.f32.mrb[1].mxu1  ;;  %1012 = vmatmul.mubr.msk.f32.vlgmr.msra.gmra.mrb[4].mxu1 %vm322_vm1, %v525_v52 }
 0x346   : > { %v603_v54 = vpop.f32.mrb[2].mxu1 }
 0x347   : > { %v1002_v55 = vpop.f32.mrb[3].mxu1 }
 0x348   : > { %1164 = shalt.err (!%p1161_p5)
}
 0x349   : > { %s1165_s16 = scalar_lea.hbm %s1477_s17, 128  ;;  %s1169_s15 = scalar_lea.hbm %s1562_s6, 256 }
 0x34a   : > { %p1166_p6 = scmp.ne.s32.totalorder %s1477_s17, %s1165_s16  ;;  %p1170_p10 = scmp.lt.u32.totalorder %s1477_s17, %s1562_s6 }
 0x34b   : > { %p1171_p11 = scmp.lt.u32.totalorder %s1169_s15, %s1165_s16  ;;  %p1173_p13 = scmp.lt.u32.totalorder %s1165_s16, %s1477_s17 }
 0x34c   : > { %p1167_p7 = pnand %p1166_p6, %p1343_p4 }
 0x34d   : > { %p1172_p12 = por %p1171_p11, %p1170_p10 }
 0x34e   : > { %p1168_p9 = pneg %p1167_p7 }
 0x34f   : > { %p1174_p0 = por %p1173_p13, %p1172_p12 }
 0x351   : > { %p1175_p1 = pnand %p1174_p0, %p1168_p9 }
 0x353   : > { %1178 = shalt.err (!%p1175_p1)
}
 0x354   : > { %1083 = dma.vmem_to_hbm [thread:$0]  (%p1343_p4), %s726_s18, 128, %s1477_s17, %s697_s19   ;;  %v870_v57 = vld [vmem:[%s1560_s4] ss:$0 sm:$0xff] }
 0x355   : > { %s285_s16 = scalar_lea.vmem [#allocation2], %s846_s11  ;;  %s1507_s28 = scalar_lea.hbm %s1561_s5, %s873_s13 }
 0x356   : > { %s711_s12 = sshll.u32 %s285_s16, 4  ;;  %s692_s17 = scalar_lea.sflag [#allocation3], %s1433_s20  ;;  %s1509_s12 = int_to_ptr.vmem [resolvable:$true] %s711_s12 }
 0x357   : > { %s1179_s18 = scalar_lea.vmem %s1509_s12, 128  ;;  %s1267_s24 = smov [#allocation2]  }
 0x358   : > { %p1180_p2 = scmp.ne.s32.totalorder %s1509_s12, %s1179_s18  ;;  %s1183_s11 = sshll.u32 %s1267_s24, 4  ;;  %s1184_s11 = int_to_ptr.vmem [resolvable:$false] %s1183_s11 }
 0x359   : > { %s1185_s19 = scalar_lea.vmem %s1184_s11, 256  ;;  %p1186_p6 = scmp.lt.s32.totalorder %s1509_s12, %s1184_s11 }
 0x35a   : > { %p1181_p3 = pnand %p1180_p2, %p1343_p4  ;;  %p1187_p7 = scmp.lt.s32.totalorder %s1185_s19, %s1179_s18 }
 0x35c   : > { %p1182_p5 = pneg %p1181_p3  ;;  %p1188_p9 = por %p1187_p7, %p1186_p6 }
 0x35e   : > { %p1189_p10 = pnand %p1188_p9, %p1182_p5 }
 0x412   : > { %v676_v56 = vpop.f32.mrb[4].mxu1 }
 0x413   : > { %v677_v58 = vadd.f32 %v676_v56, %v603_v54  ;;  %v1013_v59 = vpop.f32.mrb[5].mxu1 }
 0x415   : > { %v687_v60 = vadd.f32 %v870_v57, %v677_v58 }
 0x417   : > { %1149 = vtanh.f32 %v687_v60 }
 0x421   : > { %v1150_v61 = vpop.eup %1149 }
 0x422   : > { %689 = vst.msk [vmem:[%s285_s16] sm:$0xff] %vm322_vm1, %v1150_v61 }
 0x423   : > { %1192 = shalt.err (!%p1189_p10)
}
 0x424   : > { %s1193_s20 = scalar_lea.hbm %s1507_s28, 128  ;;  %s1197_s27 = scalar_lea.hbm %s1561_s5, 256 }
 0x425   : > { %p1194_p11 = scmp.ne.s32.totalorder %s1507_s28, %s1193_s20  ;;  %p1198_p0 = scmp.lt.u32.totalorder %s1507_s28, %s1561_s5 }
 0x426   : > { %p1199_p1 = scmp.lt.u32.totalorder %s1197_s27, %s1193_s20  ;;  %p1201_p3 = scmp.lt.u32.totalorder %s1193_s20, %s1507_s28 }
 0x427   : > { %p1195_p12 = pnand %p1194_p11, %p1343_p4 }
 0x428   : > { %p1200_p2 = por %p1199_p1, %p1198_p0 }
 0x429   : > { %p1196_p13 = pneg %p1195_p12 }
 0x42a   : > { %p1202_p5 = por %p1201_p3, %p1200_p2 }
 0x42c   : > { %p1203_p6 = pnand %p1202_p5, %p1196_p13 }
 0x42e   : > { %1206 = shalt.err (!%p1203_p6)
}
 0x42f   : > { %1082 = dma.vmem_to_hbm [thread:$0]  (%p1343_p4), %s1509_s12, 128, %s1507_s28, %s692_s17  }
 0x430 PF: > { %p1093_p7 = scmp.ge.s32.totalorder %s1261_s26, 2  ;;  %s737_s14 = sand.u32 1, %s1241_s21  }
 0x431   : > { %s738_s15 = scalar_lea.sflag [#allocation3], %s737_s14 }
 0x432   : > { %p1087_p9 = pnand %p1093_p7, %p1350_p8 }
 0x434   : > { %1232 = dma.done.wait (!%p1087_p9), %s738_s15, 128  }
 0x435   : > { %1234 = vsyncadd (!%p1087_p9), %s738_s15, 4294967168  ;;  %s747_s18 = scalar_lea.sflag [#allocation5], %s737_s14 }
 0x436   : > { %1236 = dma.done.wait (!%p1087_p9), %s747_s18, 128  }
 0x437   : > { %1238 = vsyncadd (!%p1087_p9), %s747_s18, 4294967168  ;;  %s23_s26 = sadd.s32 1, %s1261_s26   ;;  %s1567_s21 = smov %s1245_s22 }
 0x438   : > { %p20_p10 = scmp.ge.s32.totalorder %s23_s26, 4   ;;  %s1568_s22 = smov %s1249_s23 }
 0x439   : > { %s1569_s23 = smov %s1356_s10  ;;  %s1570_s24 = smov %s1257_s25 }
 0x43a   : > { %s1571_s25 = smov %s1573_s29  ;;  %22 = sbr.rel (!%p20_p10) target bundleno = 6 (0x6), region = 95 }
 0x441   :  { %752 = vsyncpa [#allocation3], 1 }
 0x442   :  { %754 = vsyncpa [#allocation3 + $0x1], 1 }
 0x443   :  { %755 = vsyncpa [#allocation5], 1 }
 0x444   :  { %757 = vsyncpa [#allocation5 + $0x1], 1 }

// kernel: tpu_custom_call.1
= control target key start
LH: loop header
LB: loop body
LE: loop exit
PB: predicated region body
PF: predicated region fallthrough
CT: control target
= control target key end

     0   :  { %12 = vsyncpa [#allocation3], 0  ;;  %s1556_s0 = inlined_call_operand.vmem [shape: f32[2,8,32], index: 0, kind: input, shape index: {}]   ;;  %s1557_s1 = inlined_call_operand.vmem [shape: f32[2,128,32], index: 1, kind: input, shape index: {}]   ;;  %s1558_s2 = inlined_call_operand.vmem [shape: f32[32,32], index: 2, kind: input, shape index: {}]   ;;  %s1559_s3 = inlined_call_operand.vmem [shape: f32[32,32], index: 3, kind: input, shape index: {}]   ;;  %s1560_s4 = inlined_call_operand.vmem [shape: f32[1,32], index: 4, kind: input, shape index: {}]   ;;  %s1561_s5 = inlined_call_operand.hbm [shape: f32[2,8,32], index: 5, kind: output, shape index: {0}]   ;;  %s1562_s6 = inlined_call_operand.hbm [shape: f32[2,8,128], index: 6, kind: output, shape index: {1}]  }
   0x1   :  { %14 = vsyncpa [#allocation3 + $0x1], 0 }
   0x2   :  { %15 = vsyncpa [#allocation5], 0 }
   0x3   :  { %17 = vsyncpa [#allocation5 + $0x1], 0  ;;  %s1303_s21 = smov 0   ;;  %s1305_s22 = smov 0  }
   0x4   :  { %s1307_s23 = smov 0   ;;  %s1309_s24 = smov 0  }
   0x5   :  { %s1311_s25 = smov 0   ;;  %s1313_s26 = smov 0  }
   0x6 LB: > { %s841_s27 = sadd.s32 4294967295, %s1261_s26   ;;  %s842_s28 = sadd.s32 4294967294, %s1261_s26   ;;  %s1261_s26 = sphi %s1313_s26, %s23_s26   ;;  %s1257_s25 = sphi %s1311_s25, %s1571_s25   ;;  %s1253_s24 = sphi %s1309_s24, %s1570_s24   ;;  %s1249_s23 = sphi %s1307_s23, %s1569_s23   ;;  %s1245_s22 = sphi %s1305_s22, %s1568_s22   ;;  %s1241_s21 = sphi %s1303_s21, %s1567_s21  }
   0x7   : > { %s35_s29 = sadd.s32 1, %s1257_s25  ;;  %s161_s30 = sadd.s32 1, %s1249_s23 }
   0x8   : > { %p37_p0 = scmp.ge.s32.totalorder %s35_s29, 2  ;;  %p171_p1 = scmp.ne.s32.totalorder %s1249_s23, %s1245_s22 }
   0x9   : > { %p172_p2 = scmp.eq.s32.totalorder %s841_s27, 1  ;;  %p177_p3 = scmp.ne.s32.totalorder %s1245_s22, %s1241_s21 }
   0xa   : > { %s1573_s29 = smov (%p37_p0, %s35_s29), 0  ;;  %p178_p5 = scmp.eq.s32.totalorder %s842_s28, 1 }
   0xb   : > { %p1343_p4 = por %p172_p2, %p171_p1  ;;  %s156_s8 = ssub.s32 %s1257_s25, %s1573_s29 }
   0xc   : > { %p845_p6 = scmp.ge.s32.totalorder %s1261_s26, 1  ;;  %p159_p7 = scmp.eq.s32.totalorder %s156_s8, 0 }
   0xd   : > { %p1350_p8 = por %p178_p5, %p177_p3  ;;  %p251_p9 = scmp.lt.s32.totalorder %s1261_s26, 3 }
   0xe   : > { %s1356_s10 = scalar_select %p159_p7, %s1249_s23, %s161_s30  }
   0xf   : > { %p252_p10 = pnand %p845_p6, %p251_p9 }
  0x10   : > { %p293_p11 = scmp.lt.s32.totalorder (!%p252_p10), %s1253_s24, 1  ;;  %v1263_v0 = vmov (!%p252_p10), 0.0|0.0   ;;  %vm1264_vm0 = vmmov (!%p252_p10), 0   ;;  %v1265_v1 = vmov (!%p252_p10), 0.0   ;;  %vm322_vm1 = vcmask (!%p252_p10), 261120   ;;  %s1433_s20 = sand.u32 (!%p252_p10), 1, %s1245_s22  }
  0x11   : > { %255 = sbr.rel (%p252_p10) target bundleno = 1072 (0x430), region = 40  ;;  %1014 = vmatprep.subr.bf16.mxu0 (!%p252_p10), %v1263_v0  ;;  %954 = vmatprep.mubr.msk.f32.mxu0 (!%p252_p10), %vm1264_vm0, %v1265_v1  ;;  %vm1378_vm2 = vmpackc.low (!%p252_p10), %vm322_vm1, %vm322_vm1  ;;  %v444_v28 = vlaneseq (!%p252_p10)  ;;  %v533_v38 = vld [vmem:[%s1559_s3] sm:$0xff] (!%p252_p10)  ;;  %v534_v39 = vld [vmem:[%s1559_s3 + $0x8] sm:$0xff] (!%p252_p10)  ;;  %s873_s13 = sshll.u32 (!%p252_p10), %s1253_s24, 7 }
  0x12   : > { %1046 = vmatprep.subr.bf16.mxu1 (!%p252_p10), %v1263_v0  ;;  %989 = vmatprep.mubr.msk.f32.mxu1 (!%p252_p10), %vm1264_vm0, %v1265_v1  ;;  %v1071_v41 = vpack.c.bf16 (!%p252_p10), %v534_v39, %v533_v38  ;;  %v535_v43 = vld [vmem:[%s1559_s3 + $0x10] sm:$0xff] (!%p252_p10)  ;;  %v536_v44 = vld [vmem:[%s1559_s3 + $0x18] sm:$0xff] (!%p252_p10)  ;;  %v529_v46 = vld [vmem:[%s1558_s2] sm:$0xff] (!%p252_p10)  ;;  %s1477_s17 = scalar_lea.hbm (!%p252_p10), %s1562_s6, %s873_s13  ;;  %s1266_s28 = smov (!%p252_p10), [#allocation4]  }
  0x13   : > { %v445_v29 = vand.u32 (!%p252_p10), 127, %v444_v28  ;;  %v1074_v45 = vpack.c.bf16 (!%p252_p10), %v536_v44, %v535_v43  ;;  %v530_v47 = vld [vmem:[%s1558_s2 + $0x8] sm:$0xff] (!%p252_p10)  ;;  %v531_v49 = vld [vmem:[%s1558_s2 + $0x10] sm:$0xff] (!%p252_p10)  ;;  %v532_v50 = vld [vmem:[%s1558_s2 + $0x18] sm:$0xff] (!%p252_p10)  ;;  %s1155_s30 = sshll.u32 (!%p252_p10), %s1266_s28, 4  ;;  %s1156_s30 = int_to_ptr.vmem [resolvable:$false] %s1155_s30 }
  0x14   : > { %v1077_v48 = vpack.c.bf16 (!%p252_p10), %v530_v47, %v529_v46  ;;  %v1080_v51 = vpack.c.bf16 (!%p252_p10), %v532_v50, %v531_v49  ;;  %s1157_s8 = scalar_lea.vmem (!%p252_p10), %s1156_s30, 256 }
  0x15   : > { %vm446_vm3 = vcmp.lt.s32.totalorder (!%p252_p10), %v445_v29, 16 }
  0x18   : > { %s1363_s11 = scalar_select %p293_p11, %s1253_s24, 1 }
  0x1a   : > { %s877_s12 = sshll.u32 %s1363_s11, 7  ;;  %s848_s16 = sshll.u32 %s1363_s11, 3 }
  0x1b   : > { %s1372_s15 = scalar_lea.vmem %s1557_s1, %s877_s12  ;;  %s299_s19 = scalar_lea.vmem %s1556_s0, %s848_s16 }
  0x1c   : > { %v306_v2 = vld [vmem:[%s1372_s15] sm:$0xff]  ;;  %v307_v3 = vld [vmem:[%s1372_s15 + $0x8] sm:$0xff]  ;;  %v308_v6 = vld [vmem:[%s1372_s15 + $0x10] sm:$0xff]  ;;  %s846_s11 = sshll.u32 %s1433_s20, 3 }
  0x1d   : > { %v1015_v5 = vpack.c.bf16 %v307_v3, %v306_v2  ;;  %v309_v7 = vld [vmem:[%s1372_s15 + $0x18] sm:$0xff]  ;;  %v310_v9 = vld [vmem:[%s1372_s15 + $0x20] sm:$0xff]  ;;  %v311_v10 = vld [vmem:[%s1372_s15 + $0x28] sm:$0xff]  ;;  %s292_s16 = scalar_lea.vmem [#allocation4], %s846_s11 }
  0x1e   : > { %v1019_v8 = vpack.c.bf16 %v309_v7, %v308_v6  ;;  %v1023_v11 = vpack.c.bf16 %v311_v10, %v310_v9  ;;  %v312_v12 = vld [vmem:[%s1372_s15 + $0x30] sm:$0xff]  ;;  %v313_v13 = vld [vmem:[%s1372_s15 + $0x38] sm:$0xff]  ;;  %v314_v15 = vld [vmem:[%s1372_s15 + $0x40] sm:$0xff]  ;;  %s725_s18 = sshll.u32 %s292_s16, 4  ;;  %s726_s18 = int_to_ptr.vmem [resolvable:$true] %s725_s18 }
  0x1f   : > { %1017 = vmatpush3.bf16.xpose.msk.msra.mxu0 %vm1378_vm2, %v1015_v5  ;;  %1048 = vmatpush3.bf16.msra.mxu1 %v1015_v5  ;;  %v1027_v14 = vpack.c.bf16 %v313_v13, %v312_v12  ;;  %v315_v16 = vld [vmem:[%s1372_s15 + $0x48] sm:$0xff]  ;;  %v316_v18 = vld [vmem:[%s1372_s15 + $0x50] sm:$0xff]  ;;  %v317_v19 = vld [vmem:[%s1372_s15 + $0x58] sm:$0xff]  ;;  %s1151_s27 = scalar_lea.vmem %s726_s18, 128  ;;  %p1158_p1 = scmp.lt.s32.totalorder %s726_s18, %s1156_s30 }
  0x20   : > { %1018 = vmatprep.subr.bf16.mxu0 %v1263_v0  ;;  %1049 = vmatprep.subr.bf16.mxu1 %v1263_v0  ;;  %v1031_v17 = vpack.c.bf16 %v315_v16, %v314_v15  ;;  %v1035_v20 = vpack.c.bf16 %v317_v19, %v316_v18  ;;  %v318_v21 = vld [vmem:[%s1372_s15 + $0x60] sm:$0xff]  ;;  %v319_v22 = vld [vmem:[%s1372_s15 + $0x68] sm:$0xff]  ;;  %v320_v24 = vld [vmem:[%s1372_s15 + $0x70] sm:$0xff]  ;;  %p1152_p12 = scmp.ne.s32.totalorder %s726_s18, %s1151_s27  ;;  %p1159_p2 = scmp.lt.s32.totalorder %s1157_s8, %s1151_s27 }
  0x21   : > { %v1039_v23 = vpack.c.bf16 %v319_v22, %v318_v21  ;;  %v321_v25 = vld [vmem:[%s1372_s15 + $0x78] sm:$0xff]  ;;  %v305_v27 = vld [vmem:[%s299_s19] sm:$0xff]  ;;  %s697_s19 = scalar_lea.sflag [#allocation5], %s1433_s20 }
  0x22   : > { %v1043_v26 = vpack.c.bf16 %v321_v25, %v320_v24  ;;  %p1153_p13 = pnand %p1152_p12, %p1343_p4  ;;  %p1160_p3 = por %p1159_p2, %p1158_p1 }
  0x23   : > { %1051 = vmatpush3.bf16.msra.mxu1 %v1019_v8 }
  0x24   : > { %1052 = vmatprep.subr.bf16.mxu1 %v1263_v0  ;;  %p1154_p0 = pneg %p1153_p13 }
  0x26   : > { %p1161_p5 = pnand %p1160_p3, %p1154_p0 }
  0x27   : > { %1021 = vmatpush3.bf16.xpose.msk.msra.mxu0 %vm1378_vm2, %v1019_v8  ;;  %1054 = vmatpush3.bf16.msra.mxu1 %v1023_v11 }
  0x28   : > { %1022 = vmatprep.subr.bf16.mxu0 %v1263_v0  ;;  %1055 = vmatprep.subr.bf16.mxu1 %v1263_v0 }
  0x2b   : > { %1057 = vmatpush3.bf16.msra.mxu1 %v1027_v14 }
  0x2c   : > { %1058 = vmatprep.subr.bf16.mxu1 %v1263_v0 }
  0x2f   : > { %1025 = vmatpush3.bf16.xpose.msk.msra.mxu0 %vm1378_vm2, %v1023_v11  ;;  %1060 = vmatpush3.bf16.msra.mxu1 %v1031_v17 }
  0x30   : > { %1026 = vmatprep.subr.bf16.mxu0 %v1263_v0  ;;  %1061 = vmatprep.subr.bf16.mxu1 %v1263_v0 }
  0x33   : > { %1063 = vmatpush3.bf16.msra.mxu1 %v1035_v20 }
  0x34   : > { %1064 = vmatprep.subr.bf16.mxu1 %v1263_v0 }
  0x37   : > { %1029 = vmatpush3.bf16.xpose.msk.msra.mxu0 %vm1378_vm2, %v1027_v14  ;;  %1066 = vmatpush3.bf16.msra.mxu1 %v1039_v23 }
  0x38   : > { %1030 = vmatprep.subr.bf16.mxu0 %v1263_v0  ;;  %1067 = vmatprep.subr.bf16.mxu1 %v1263_v0 }
  0x3b   : > { %1069 = vmatpush3.bf16.msra.mxu1 %v1043_v26 }
  0x3c   : > { %1070 = vmatprep.subr.bf16.mxu1 %v1263_v0 }
  0x3f   : > { %1033 = vmatpush3.bf16.xpose.msk.msra.mxu0 %vm1378_vm2, %v1031_v17 }
  0x40   : > { %1034 = vmatprep.subr.bf16.mxu0 %v1263_v0 }
  0x47   : > { %1037 = vmatpush3.bf16.xpose.msk.msra.mxu0 %vm1378_vm2, %v1035_v20 }
  0x48   : > { %1038 = vmatprep.subr.bf16.mxu0 %v1263_v0 }
  0x4f   : > { %1041 = vmatpush3.bf16.xpose.msk.msra.mxu0 %vm1378_vm2, %v1039_v23 }
  0x50   : > { %1042 = vmatprep.subr.bf16.mxu0 %v1263_v0 }
  0x57   : > { %1045 = vmatpush3.bf16.xpose.msk.msra.mxu0 %vm1378_vm2, %v1043_v26 }
  0x5e   : > { %955 = vmatmul.mubr.msk.f32.vlgmr.msra.gmra.mrb[0].mxu0 %vm322_vm1, %v305_v27 }
 0x131   : > { %v440_v30 = vpop.f32.mrb[0].mxu0 }
 0x132   : > { %v956_v31 = vpop.f32.mrb[1].mxu0  ;;  %v449_v32 = vsel %vm446_vm3, %v440_v30, -inf }
 0x133   : > { %450 = vmax.xlane.f32.xlu0 %v449_v32 }
 0x1c0   : > { %v451_v33 = vpop.xlane.xlu0 %450 }
 0x1c1   : > { %v452_v34 = vsub.f32 %v449_v32, %v451_v33 }
 0x1c3   : > { %v453_v35 = vmul.f32 1.442695, %v452_v34 }
 0x1c5   : > { %1145 = vpow2.f32 %v453_v35 }
 0x1cf   : > { %v1146_v36 = vpop.eup %1145 }
 0x1d0   : > { %455 = vadd.xlane.f32.xlu0 %v1146_v36 }
 0x25d   : > { %v456_v37 = vpop.xlane.xlu0 %455 }
 0x25e   : > { %1147 = vrcp.f32 %v456_v37 }
 0x268   : > { %v1148_v40 = vpop.eup %1147 }
 0x269   : > { %v458_v42 = vmul.f32 %v1148_v40, %v1146_v36 }
 0x26b   : > { %990 = vmatmul.mubr.f32.vlgmr.msra.gmra.mrb[0].mxu1 %v458_v42  ;;  %690 = vst [vmem:[%s292_s16] sm:$0xff] %v458_v42 }
 0x26c   : > { %1072 = vmatpush3.bf16.msra.mxu1 %v1071_v41  ;;  %1000 = vmatprep.mubr.msk.f32.mxu1 %vm1264_vm0, %v1265_v1 }
 0x26d   : > { %1073 = vmatprep.subr.bf16.mxu1 %v1263_v0 }
 0x270   : > { %1075 = vmatpush3.bf16.msra.mxu1 %v1074_v45 }
 0x271   : > { %1076 = vmatprep.subr.bf16.mxu1 %v1263_v0 }
 0x273   : > { %1001 = vmatmul.mubr.msk.f32.vlgmr.msra.gmra.mrb[2].mxu1 %vm322_vm1, %v305_v27 }
 0x274   : > { %1078 = vmatpush3.bf16.msra.mxu1 %v1077_v48  ;;  %1011 = vmatprep.mubr.msk.f32.mxu1 %vm1264_vm0, %v1265_v1 }
 0x275   : > { %1079 = vmatprep.subr.bf16.mxu1 %v1263_v0 }
 0x278   : > { %1081 = vmatpush3.bf16.msra.mxu1 %v1080_v51 }
 0x33e   : > { %v525_v52 = vpop.f32.mrb[0].mxu1 }
 0x33f   : > { %v991_v53 = vpop.f32.mrb[1].mxu1  ;;  %1012 = vmatmul.mubr.msk.f32.vlgmr.msra.gmra.mrb[4].mxu1 %vm322_vm1, %v525_v52 }
 0x346   : > { %v603_v54 = vpop.f32.mrb[2].mxu1 }
 0x347   : > { %v1002_v55 = vpop.f32.mrb[3].mxu1 }
 0x348   : > { %1164 = shalt.err (!%p1161_p5)
}
 0x349   : > { %s1165_s16 = scalar_lea.hbm %s1477_s17, 128  ;;  %s1169_s15 = scalar_lea.hbm %s1562_s6, 256 }
 0x34a   : > { %p1166_p6 = scmp.ne.s32.totalorder %s1477_s17, %s1165_s16  ;;  %p1170_p10 = scmp.lt.u32.totalorder %s1477_s17, %s1562_s6 }
 0x34b   : > { %p1171_p11 = scmp.lt.u32.totalorder %s1169_s15, %s1165_s16  ;;  %p1173_p13 = scmp.lt.u32.totalorder %s1165_s16, %s1477_s17 }
 0x34c   : > { %p1167_p7 = pnand %p1166_p6, %p1343_p4 }
 0x34d   : > { %p1172_p12 = por %p1171_p11, %p1170_p10 }
 0x34e   : > { %p1168_p9 = pneg %p1167_p7 }
 0x34f   : > { %p1174_p0 = por %p1173_p13, %p1172_p12 }
 0x351   : > { %p1175_p1 = pnand %p1174_p0, %p1168_p9 }
 0x353   : > { %1178 = shalt.err (!%p1175_p1)
}
 0x354   : > { %1083 = dma.vmem_to_hbm [thread:$0]  (%p1343_p4), %s726_s18, 128, %s1477_s17, %s697_s19   ;;  %v870_v57 = vld [vmem:[%s1560_s4] ss:$0 sm:$0xff] }
 0x355   : > { %s285_s16 = scalar_lea.vmem [#allocation2], %s846_s11  ;;  %s1507_s28 = scalar_lea.hbm %s1561_s5, %s873_s13 }
 0x356   : > { %s711_s12 = sshll.u32 %s285_s16, 4  ;;  %s692_s17 = scalar_lea.sflag [#allocation3], %s1433_s20  ;;  %s1509_s12 = int_to_ptr.vmem [resolvable:$true] %s711_s12 }
 0x357   : > { %s1179_s18 = scalar_lea.vmem %s1509_s12, 128  ;;  %s1267_s24 = smov [#allocation2]  }
 0x358   : > { %p1180_p2 = scmp.ne.s32.totalorder %s1509_s12, %s1179_s18  ;;  %s1183_s11 = sshll.u32 %s1267_s24, 4  ;;  %s1184_s11 = int_to_ptr.vmem [resolvable:$false] %s1183_s11 }
 0x359   : > { %s1185_s19 = scalar_lea.vmem %s1184_s11, 256  ;;  %p1186_p6 = scmp.lt.s32.totalorder %s1509_s12, %s1184_s11 }
 0x35a   : > { %p1181_p3 = pnand %p1180_p2, %p1343_p4  ;;  %p1187_p7 = scmp.lt.s32.totalorder %s1185_s19, %s1179_s18 }
 0x35c   : > { %p1182_p5 = pneg %p1181_p3  ;;  %p1188_p9 = por %p1187_p7, %p1186_p6 }
 0x35e   : > { %p1189_p10 = pnand %p1188_p9, %p1182_p5 }
 0x412   : > { %v676_v56 = vpop.f32.mrb[4].mxu1 }
 0x413   : > { %v677_v58 = vadd.f32 %v676_v56, %v603_v54  ;;  %v1013_v59 = vpop.f32.mrb[5].mxu1 }
 0x415   : > { %v687_v60 = vadd.f32 %v870_v57, %v677_v58 }
 0x417   : > { %1149 = vtanh.f32 %v687_v60 }
 0x421   : > { %v1150_v61 = vpop.eup %1149 }
 0x422   : > { %689 = vst.msk [vmem:[%s285_s16] sm:$0xff] %vm322_vm1, %v1150_v61 }
 0x423   : > { %1192 = shalt.err (!%p1189_p10)
}
 0x424   : > { %s1193_s20 = scalar_lea.hbm %s1507_s28, 128  ;;  %s1197_s27 = scalar_lea.hbm %s1561_s5, 256 }
 0x425   : > { %p1194_p11 = scmp.ne.s32.totalorder %s1507_s28, %s1193_s20  ;;  %p1198_p0 = scmp.lt.u32.totalorder %s1507_s28, %s1561_s5 }
 0x426   : > { %p1199_p1 = scmp.lt.u32.totalorder %s1197_s27, %s1193_s20  ;;  %p1201_p3 = scmp.lt.u32.totalorder %s1193_s20, %s1507_s28 }
 0x427   : > { %p1195_p12 = pnand %p1194_p11, %p1343_p4 }
 0x428   : > { %p1200_p2 = por %p1199_p1, %p1198_p0 }
 0x429   : > { %p1196_p13 = pneg %p1195_p12 }
 0x42a   : > { %p1202_p5 = por %p1201_p3, %p1200_p2 }
 0x42c   : > { %p1203_p6 = pnand %p1202_p5, %p1196_p13 }
 0x42e   : > { %1206 = shalt.err (!%p1203_p6)
}
 0x42f   : > { %1082 = dma.vmem_to_hbm [thread:$0]  (%p1343_p4), %s1509_s12, 128, %s1507_s28, %s692_s17  }
 0x430 PF: > { %p1093_p7 = scmp.ge.s32.totalorder %s1261_s26, 2  ;;  %s737_s14 = sand.u32 1, %s1241_s21  }
 0x431   : > { %s738_s15 = scalar_lea.sflag [#allocation3], %s737_s14 }
 0x432   : > { %p1087_p9 = pnand %p1093_p7, %p1350_p8 }
 0x434   : > { %1232 = dma.done.wait (!%p1087_p9), %s738_s15, 128  }
 0x435   : > { %1234 = vsyncadd (!%p1087_p9), %s738_s15, 4294967168  ;;  %s747_s18 = scalar_lea.sflag [#allocation5], %s737_s14 }
 0x436   : > { %1236 = dma.done.wait (!%p1087_p9), %s747_s18, 128  }
 0x437   : > { %1238 = vsyncadd (!%p1087_p9), %s747_s18, 4294967168  ;;  %s23_s26 = sadd.s32 1, %s1261_s26   ;;  %s1567_s21 = smov %s1245_s22 }
 0x438   : > { %p20_p10 = scmp.ge.s32.totalorder %s23_s26, 4   ;;  %s1568_s22 = smov %s1249_s23 }
 0x439   : > { %s1569_s23 = smov %s1356_s10  ;;  %s1570_s24 = smov %s1257_s25 }
 0x43a   : > { %s1571_s25 = smov %s1573_s29  ;;  %22 = sbr.rel (!%p20_p10) target bundleno = 6 (0x6), region = 95 }
 0x441   :  { %752 = vsyncpa [#allocation3], 1 }
 0x442   :  { %754 = vsyncpa [#allocation3 + $0x1], 1 }
 0x443   :  { %755 = vsyncpa [#allocation5], 1 }
 0x444   :  { %757 = vsyncpa [#allocation5 + $0x1], 1 }

</bundles_post_ra>
